<compile_context>
chip_gen: v7x
topology: tpu7x:2x2x1
jax: 0.10.0
libtpu: 0.0.40
codegen_flags: <defaults>
</compile_context>

<pallas_src>
import functools

import jax
import jax.numpy as jnp
from jax.experimental import pallas as pl
from jax.experimental.pallas import tpu as pltpu


# ---------------------------------------------------------------------------
# Kernel
# ---------------------------------------------------------------------------
def _encoder_kernel(x_ref, w1_ref, b1_ref, w2_ref, b2_ref, eps_ref, out_ref,
                    *, latent_dim):
    x = x_ref[...]

    # Fused first layer: [h_mu | h_lv] = relu(x @ [W1m | W1l] + [0 | b1l])
    h = jnp.maximum(
        jnp.dot(x, w1_ref[...], preferred_element_type=jnp.float32)
        + b1_ref[...],
        0.0)

    # Fused second layer: [mu | logvar] = h @ blockdiag(W2m, W2l) + [b2m | b2l]
    ml = jnp.dot(h, w2_ref[...], preferred_element_type=jnp.float32) + b2_ref[...]

    mu = ml[:, :latent_dim]
    logvar = ml[:, latent_dim:]
    sigma = jnp.exp(logvar * 0.5)
    z = mu + sigma * eps_ref[...]

    # Single lane-contiguous output slab: [ z | mu | sigma ]
    out_ref[...] = jnp.concatenate([z, mu, sigma], axis=-1).astype(out_ref.dtype)


# ---------------------------------------------------------------------------
# One-time parameter fusion (hoisted out of the per-call hot path)
# ---------------------------------------------------------------------------
def prepare_fused_params(params):
    """Build the fused, pre-transposed (in, out) weights once."""
    hidden_dim = params["w1_mean"].shape[0]
    latent_dim = params["w2_mean"].shape[0]

    # First layer: concat along output axis. Mean branch has no bias -> zeros.
    w1 = jnp.concatenate([params["w1_mean"].T, params["w1_logvar"].T], axis=1)
    b1 = jnp.concatenate(
        [jnp.zeros((hidden_dim,), jnp.float32), params["b1_logvar"]]
    ).reshape(1, 2 * hidden_dim)

    # Second layer: block-diagonal so one dot yields [mu | logvar].
    zeros = jnp.zeros((hidden_dim, latent_dim), jnp.float32)
    w2 = jnp.concatenate(
        [jnp.concatenate([params["w2_mean"].T, zeros], axis=1),
         jnp.concatenate([zeros, params["w2_logvar"].T], axis=1)],
        axis=0)                                             # (2H, 2L)
    b2 = jnp.concatenate(
        [params["b2_mean"], params["b2_logvar"]]).reshape(1, 2 * latent_dim)

    return {"w1": w1, "b1": b1, "w2": w2, "b2": b2}


# ---------------------------------------------------------------------------
# Jitted pallas_call driver
# ---------------------------------------------------------------------------
@functools.partial(jax.jit, static_argnames=("tile_b",))
def _encoder_call(x, eps, w1, b1, w2, b2, *, tile_b):
    padded_b, input_dim = x.shape
    two_h = b1.shape[1]
    two_l = b2.shape[1]
    latent_dim = two_l // 2
    grid = (padded_b // tile_b,)

    kernel = functools.partial(_encoder_kernel, latent_dim=latent_dim)

    return pl.pallas_call(
        kernel,
        out_shape=jax.ShapeDtypeStruct((padded_b, 3 * latent_dim), jnp.float32),
        grid=grid,
        in_specs=[
            pl.BlockSpec((tile_b, input_dim), lambda i: (i, 0)),   # x (batch-tiled)
            pl.BlockSpec((input_dim, two_h), lambda i: (0, 0)),    # fused W1
            pl.BlockSpec((1, two_h), lambda i: (0, 0)),            # fused b1
            pl.BlockSpec((two_h, two_l), lambda i: (0, 0)),        # block-diag W2
            pl.BlockSpec((1, two_l), lambda i: (0, 0)),            # fused b2
            pl.BlockSpec((tile_b, latent_dim), lambda i: (i, 0)),  # eps (batch-tiled)
        ],
        out_specs=pl.BlockSpec((tile_b, 3 * latent_dim), lambda i: (i, 0)),
        compiler_params=pltpu.CompilerParams(
            dimension_semantics=("parallel",),
            vmem_limit_bytes=32 * 1024 * 1024,
        ),
    )(x, w1, b1, w2, b2, eps)


def _round_up(n, m):
    return ((n + m - 1) // m) * m


def relu_variational_encoder(x, fused, eps):
    """x: (B, input_dim) f32; eps: (B, latent_dim) f32 (host-supplied noise,
    since torch.randn is host RNG); fused: output of prepare_fused_params."""
    B = x.shape[0]
    latent_dim = fused["b2"].shape[1] // 2

    # Batch tiling: whole (sublane-padded) batch if small, else 512-row tiles.
    if B <= 512:
        padded_b = _round_up(B, 8)
        tile_b = padded_b
    else:
        padded_b = _round_up(B, 512)
        tile_b = 512

    if padded_b != B:
        pad = padded_b - B
        x = jnp.pad(x, ((0, pad), (0, 0)))
        eps = jnp.pad(eps, ((0, pad), (0, 0)))

    out = _encoder_call(x, eps, fused["w1"], fused["b1"], fused["w2"],
                        fused["b2"], tile_b=tile_b)
    out = out[:B]
    return {
        "z": out[:, :latent_dim],
        "mu": out[:, latent_dim:2 * latent_dim],
        "sigma": out[:, 2 * latent_dim:],
    }


# ---------------------------------------------------------------------------
# Params / reference / demo
# ---------------------------------------------------------------------------
def init_params(key, input_dim, hidden_dim, latent_dim):
    """Deterministic synthetic params with PyTorch nn.Linear conventions:
    weight shape (out_features, in_features)."""
    ks = jax.random.split(key, 6)

    def u(k, shape, fan_in):
        bound = 1.0 / jnp.sqrt(fan_in)
        return jax.random.uniform(k, shape, jnp.float32, -bound, bound)

    return {
        "w1_mean":   u(ks[0], (hidden_dim, input_dim), input_dim),
        "w2_mean":   u(ks[1], (latent_dim, hidden_dim), hidden_dim),
        "b2_mean":   u(ks[2], (latent_dim,), hidden_dim),
        "w1_logvar": u(ks[3], (hidden_dim, input_dim), input_dim),
        "b1_logvar": u(ks[4], (hidden_dim,), input_dim),
        "w2_logvar": u(ks[5], (latent_dim, hidden_dim), hidden_dim),
        "b2_logvar": jnp.zeros((latent_dim,), jnp.float32),
    }


def _reference(x, params, eps):
    h_mu = jnp.maximum(x @ params["w1_mean"].T, 0.0)
    mu = h_mu @ params["w2_mean"].T + params["b2_mean"]
    h_lv = jnp.maximum(x @ params["w1_logvar"].T + params["b1_logvar"], 0.0)
    logvar = h_lv @ params["w2_logvar"].T + params["b2_logvar"]
    sigma = jnp.exp(logvar / 2.0)
    return {"z": mu + sigma * eps, "mu": mu, "sigma": sigma}


if __name__ == "__main__":
    key = jax.random.PRNGKey(0)
    k_param, k_x, k_eps = jax.random.split(key, 3)

    batch, input_dim, hidden_dim, latent_dim = 8, 32, 32, 16
    params = init_params(k_param, input_dim, hidden_dim, latent_dim)
    fused = prepare_fused_params(params)  # one-time weight fusion / transpose

    x = jax.random.normal(k_x, (batch, input_dim), jnp.float32)
    # torch.randn(batch, latent_dim) equivalent — noise supplied from host RNG.
    eps = jax.random.normal(k_eps, (batch, latent_dim), jnp.float32)

    out = relu_variational_encoder(x, fused, eps)
    jax.block_until_ready(out)

    ref = _reference(x, params, eps)
    for name in ("z", "mu", "sigma"):
        assert jnp.allclose(out[name], ref[name], atol=1e-5, rtol=1e-5), name

    print("KERNEL_OK")
</pallas_src>

<mosaic_0001>
module attributes {stable_mosaic.version = 11 : i64} {
  func.func @_encoder_kernel(%arg0: i32, %arg1: memref<8x32xf32, #tpu.memory_space<vmem>>, %arg2: memref<32x64xf32, #tpu.memory_space<vmem>>, %arg3: memref<1x64xf32, #tpu.memory_space<vmem>>, %arg4: memref<64x32xf32, #tpu.memory_space<vmem>>, %arg5: memref<1x32xf32, #tpu.memory_space<vmem>>, %arg6: memref<8x16xf32, #tpu.memory_space<vmem>>, %arg7: memref<8x48xf32, #tpu.memory_space<vmem>>) attributes {dimension_semantics = [#tpu.dimension_semantics<parallel>], iteration_bounds = array<i64: 1>, scalar_prefetch = 0 : i64, scratch_operands = 0 : i64, tpu.core_type = #tpu.core_type<tc>, window_params = [{transform_indices = @transform_0, window_bounds = array<i64: 8, 32>}, {pipeline_mode = #tpu.pipeline_mode<synchronous>, transform_indices = @transform_1, window_bounds = array<i64: 32, 64>}, {pipeline_mode = #tpu.pipeline_mode<synchronous>, transform_indices = @transform_2, window_bounds = array<i64: 1, 64>}, {pipeline_mode = #tpu.pipeline_mode<synchronous>, transform_indices = @transform_3, window_bounds = array<i64: 64, 32>}, {pipeline_mode = #tpu.pipeline_mode<synchronous>, transform_indices = @transform_4, window_bounds = array<i64: 1, 32>}, {transform_indices = @transform_5, window_bounds = array<i64: 8, 16>}, {transform_indices = @transform_6, window_bounds = array<i64: 8, 48>}]} {
    %c0 = arith.constant 0 : index
    %c0_0 = arith.constant 0 : index
    %0 = vector.load %arg1[%c0, %c0_0] : memref<8x32xf32, #tpu.memory_space<vmem>>, vector<8x32xf32>
    %c0_1 = arith.constant 0 : index
    %c0_2 = arith.constant 0 : index
    %1 = vector.load %arg2[%c0_1, %c0_2] : memref<32x64xf32, #tpu.memory_space<vmem>>, vector<32x64xf32>
    %cst = arith.constant dense<0.000000e+00> : vector<8x64xf32>
    %2 = tpu.matmul %0, %1, %cst {dimension_numbers = #tpu.dot_dimension_numbers<[1], [0], [0], [1], [0, 0, 1, 1], [], []>} : vector<8x32xf32>, vector<32x64xf32>, vector<8x64xf32> -> vector<8x64xf32>
    %c0_3 = arith.constant 0 : index
    %c0_4 = arith.constant 0 : index
    %3 = vector.load %arg3[%c0_3, %c0_4] : memref<1x64xf32, #tpu.memory_space<vmem>>, vector<1x64xf32>
    %4 = vector.broadcast %3 : vector<1x64xf32> to vector<8x64xf32>
    %5 = arith.addf %2, %4 : vector<8x64xf32>
    %cst_5 = arith.constant 0.000000e+00 : f32
    %6 = vector.broadcast %cst_5 : f32 to vector<8x64xf32>
    %7 = arith.maximumf %5, %6 : vector<8x64xf32>
    %c0_6 = arith.constant 0 : index
    %c0_7 = arith.constant 0 : index
    %8 = vector.load %arg4[%c0_6, %c0_7] : memref<64x32xf32, #tpu.memory_space<vmem>>, vector<64x32xf32>
    %cst_8 = arith.constant dense<0.000000e+00> : vector<8x32xf32>
    %9 = tpu.matmul %7, %8, %cst_8 {dimension_numbers = #tpu.dot_dimension_numbers<[1], [0], [0], [1], [0, 0, 1, 1], [], []>} : vector<8x64xf32>, vector<64x32xf32>, vector<8x32xf32> -> vector<8x32xf32>
    %c0_9 = arith.constant 0 : index
    %c0_10 = arith.constant 0 : index
    %10 = vector.load %arg5[%c0_9, %c0_10] : memref<1x32xf32, #tpu.memory_space<vmem>>, vector<1x32xf32>
    %11 = vector.broadcast %10 : vector<1x32xf32> to vector<8x32xf32>
    %12 = arith.addf %9, %11 : vector<8x32xf32>
    %13 = vector.extract_strided_slice %12 {offsets = [0, 0], sizes = [8, 16], strides = [1, 1]} : vector<8x32xf32> to vector<8x16xf32>
    %14 = vector.extract_strided_slice %12 {offsets = [0, 16], sizes = [8, 16], strides = [1, 1]} : vector<8x32xf32> to vector<8x16xf32>
    %cst_11 = arith.constant 5.000000e-01 : f32
    %15 = vector.broadcast %cst_11 : f32 to vector<8x16xf32>
    %16 = arith.mulf %14, %15 : vector<8x16xf32>
    %17 = math.exp %16 : vector<8x16xf32>
    %c0_12 = arith.constant 0 : index
    %c0_13 = arith.constant 0 : index
    %18 = vector.load %arg6[%c0_12, %c0_13] : memref<8x16xf32, #tpu.memory_space<vmem>>, vector<8x16xf32>
    %19 = arith.mulf %17, %18 : vector<8x16xf32>
    %20 = arith.addf %13, %19 : vector<8x16xf32>
    %21 = tpu.concatenate %20, %13, %17 in 1 : vector<8x16xf32>, vector<8x16xf32>, vector<8x16xf32> -> vector<8x48xf32>
    %c0_14 = arith.constant 0 : index
    %c0_15 = arith.constant 0 : index
    %22 = vector.load %arg7[%c0_14, %c0_15] : memref<8x48xf32, #tpu.memory_space<vmem>>, vector<8x48xf32>
    tpu.vector_store %arg7[%c0_14, %c0_15], %21 {strides = array<i32>} : memref<8x48xf32, #tpu.memory_space<vmem>>, vector<8x48xf32>,
    return
  }
  func.func @transform_0(%arg0: i32) -> (i32, i32) {
    %c0_i32 = arith.constant 0 : i32
    %c0_i32_0 = arith.constant 0 : i32
    return %arg0, %c0_i32 : i32, i32
  }
  func.func @transform_1(%arg0: i32) -> (i32, i32) {
    %c0_i32 = arith.constant 0 : i32
    %c0_i32_0 = arith.constant 0 : i32
    %c0_i32_1 = arith.constant 0 : i32
    return %c0_i32, %c0_i32_0 : i32, i32
  }
  func.func @transform_2(%arg0: i32) -> (i32, i32) {
    %c0_i32 = arith.constant 0 : i32
    %c0_i32_0 = arith.constant 0 : i32
    %c0_i32_1 = arith.constant 0 : i32
    return %c0_i32, %c0_i32_0 : i32, i32
  }
  func.func @transform_3(%arg0: i32) -> (i32, i32) {
    %c0_i32 = arith.constant 0 : i32
    %c0_i32_0 = arith.constant 0 : i32
    %c0_i32_1 = arith.constant 0 : i32
    return %c0_i32, %c0_i32_0 : i32, i32
  }
  func.func @transform_4(%arg0: i32) -> (i32, i32) {
    %c0_i32 = arith.constant 0 : i32
    %c0_i32_0 = arith.constant 0 : i32
    %c0_i32_1 = arith.constant 0 : i32
    return %c0_i32, %c0_i32_0 : i32, i32
  }
  func.func @transform_5(%arg0: i32) -> (i32, i32) {
    %c0_i32 = arith.constant 0 : i32
    %c0_i32_0 = arith.constant 0 : i32
    return %arg0, %c0_i32 : i32, i32
  }
  func.func @transform_6(%arg0: i32) -> (i32, i32) {
    %c0_i32 = arith.constant 0 : i32
    %c0_i32_0 = arith.constant 0 : i32
    return %arg0, %c0_i32 : i32, i32
  }
}

</mosaic_0001>

<bundles_post_ra>
// kernel: _encoder_call.1
= control target key start
LH: loop header
LB: loop body
LE: loop exit
PB: predicated region body
PF: predicated region fallthrough
CT: control target
= control target key end

     0   :  { %v339_v3 = vmov 0.0|0.0   ;;  %vm340_vm0 = vmmov 0   ;;  %v341_v6 = vmov 0.0   ;;  %s442_s0 = inlined_call_operand.vmem [shape: f32[8,32], index: 0, kind: input, shape index: {}]   ;;  %s443_s1 = inlined_call_operand.vmem [shape: f32[32,64], index: 1, kind: input, shape index: {}]   ;;  %s444_s2 = inlined_call_operand.vmem [shape: f32[1,64], index: 2, kind: input, shape index: {}]   ;;  %s445_s3 = inlined_call_operand.vmem [shape: f32[64,32], index: 3, kind: input, shape index: {}]   ;;  %s446_s4 = inlined_call_operand.vmem [shape: f32[1,32], index: 4, kind: input, shape index: {}]   ;;  %s447_s5 = inlined_call_operand.vmem [shape: f32[8,16], index: 5, kind: input, shape index: {}]   ;;  %s448_s6 = inlined_call_operand.hbm [shape: f32[8,48], index: 6, kind: output, shape index: {}]  }
   0x1   :  { %v25_v0 = vld [vmem:[%s443_s1] sm:$0xff]  ;;  %v26_v1 = vld [vmem:[%s443_s1 + $0x8] sm:$0xff]  ;;  %v27_v2 = vld [vmem:[%s443_s1 + $0x10] sm:$0xff]  ;;  %289 = vmatprep.subr.bf16.mxu0 %v339_v3  ;;  %267 = vmatprep.mubr.msk.f32.mxu0 %vm340_vm0, %v341_v6 }
   0x2   :  { %v290_v4 = vpack.c.bf16 %v26_v1, %v25_v0  ;;  %v28_v5 = vld [vmem:[%s443_s1 + $0x18] sm:$0xff]  ;;  %v111_v7 = vld [vmem:[%s445_s3] sm:$0xff]  ;;  %295 = vmatprep.subr.bf16.mxu1 %v339_v3  ;;  %v112_v8 = vld [vmem:[%s445_s3 + $0x8] sm:$0xff]  ;;  %286 = vmatprep.mubr.msk.f32.mxu1 %vm340_vm0, %v341_v6 }
   0x3   :  { %v113_v9 = vld [vmem:[%s445_s3 + $0x10] sm:$0xff]  ;;  %v114_v10 = vld [vmem:[%s445_s3 + $0x18] sm:$0xff]  ;;  %v293_v11 = vpack.c.bf16 %v28_v5, %v27_v2  ;;  %v296_v12 = vpack.c.bf16 %v112_v8, %v111_v7 }
   0x4   :  { %291 = vmatpush3.bf16.msra.mxu0 %v290_v4 }
   0x5   :  { %292 = vmatprep.subr.bf16.mxu0 %v339_v3 }
   0x6   :  { %11 = vsyncpa [#allocation3], 0  ;;  %297 = vmatpush3.bf16.msra.mxu1 %v296_v12  ;;  %v299_v13 = vpack.c.bf16 %v114_v10, %v113_v9  ;;  %v115_v14 = vld [vmem:[%s445_s3 + $0x20] sm:$0xff]  ;;  %v116_v15 = vld [vmem:[%s445_s3 + $0x28] sm:$0xff]  ;;  %vm36_vm1 = vcmask 261120   ;;  %s342_s23 = smov 16  }
   0x7   :  { %298 = vmatprep.subr.bf16.mxu1 %v339_v3  ;;  %v24_v16 = vld [vmem:[%s442_s0] sm:$0xff]  ;;  %v302_v17 = vpack.c.bf16 %v116_v15, %v115_v14  ;;  %v117_v18 = vld [vmem:[%s445_s3 + $0x30] sm:$0xff]  ;;  %v118_v19 = vld [vmem:[%s445_s3 + $0x38] sm:$0xff]  ;;  %vm126_vm2 = vcmask 523264   ;;  %vm222_vm3 = vcmask 130048   ;;  %vm225_vm4 = vcmask 392192  }
   0x8   :  { %294 = vmatpush3.bf16.msra.mxu0 %v293_v11  ;;  %v305_v20 = vpack.c.bf16 %v118_v19, %v117_v18  ;;  %v203_v21 = vld [vmem:[%s447_s5] sm:$0xff]  ;;  %s344_s5 = smov [#allocation2]  }
   0x9   :  { %205 = vrot.lane.b32.xlu0 %v203_v21, %s342_s23  ;;  %v241_v22 = vld [vmem:[%s444_s2] ss:$0 sm:$0xff]  ;;  %s343_s2 = smov 112   ;;  %s233_s27 = sshll.u32 %s344_s5, 4  ;;  %s234_s27 = int_to_ptr.vmem [resolvable:$true] %s233_s27 }
   0xa   :  { %300 = vmatpush3.bf16.msra.mxu1 %v299_v13  ;;  %v243_v27 = vld [vmem:[%s446_s4] ss:$0 sm:$0xff]  ;;  %s315_s4 = scalar_lea.vmem %s234_s27, 128  ;;  %p320_p1 = scmp.lt.s32.totalorder %s234_s27, %s234_s27 }
   0xb   :  { %268 = vmatmul.mubr.msk.f32.vlgmr.msra.gmra.mrb[0].mxu0 %vm36_vm1, %v24_v16  ;;  %301 = vmatprep.subr.bf16.mxu1 %v339_v3  ;;  %p316_p0 = scmp.ne.s32.totalorder %s234_s27, %s315_s4  ;;  %p321_p2 = scmp.lt.s32.totalorder %s315_s4, %s315_s4 }
   0xd   :  { %p322_p3 = por %p321_p2, %p320_p1 }
   0xe   :  { %303 = vmatpush3.bf16.msra.mxu1 %v302_v17 }
   0xf   :  { %304 = vmatprep.subr.bf16.mxu1 %v339_v3  ;;  %p323_p4 = pnand %p322_p3, %p316_p0 }
  0x12   :  { %306 = vmatpush3.bf16.msra.mxu1 %v305_v20 }
  0x7b   :  { %v206_v33 = vpop.permute.xlu0 %205 }
  0xde   :  { %v106_v23 = vpop.f32.mrb[0].mxu0 }
  0xdf   :  { %v107_v24 = vadd.f32 %v241_v22, %v106_v23  ;;  %v269_v25 = vpop.f32.mrb[1].mxu0 }
  0xe1   :  { %v110_v26 = vmax.f32 %v107_v24, 0.0 }
  0xe3   :  { %287 = vmatmul.mubr.msk.f32.vlgmr.msra.gmra.mrb[0].mxu1 %vm126_vm2, %v110_v26 }
 0x1b6   :  { %v196_v28 = vpop.f32.mrb[0].mxu1 }
 0x1b7   :  { %v197_v29 = vadd.f32 %v243_v27, %v196_v28  ;;  %v288_v30 = vpop.f32.mrb[1].mxu1 }
 0x1b9   :  { %v200_v31 = vmul.f32 0.5, %v197_v29  ;;  %215 = vrot.lane.b32.xlu1 %v197_v29, %s342_s23 }
 0x1bb   :  { %v201_v32 = vmul.f32 1.442695, %v200_v31 }
 0x1bd   :  { %313 = vpow2.f32 %v201_v32 }
 0x1c7   :  { %v314_v34 = vpop.eup %313 }
 0x1c8   :  { %v208_v35 = vmul.f32 %v314_v34, %v206_v33  ;;  %219 = vrot.lane.b32.xlu1 %v314_v34, %s342_s23 }
 0x1ca   :  { %210 = vrot.lane.b32.xlu0 %v208_v35, %s343_s2 }
 0x22b   :  { %v216_v36 = vpop.permute.xlu1 %215 }
 0x23a   :  { %v220_v39 = vpop.permute.xlu1 %219 }
 0x23c   :  { %v211_v37 = vpop.permute.xlu0 %210 }
 0x23d   :  { %v213_v38 = vadd.f32 %v211_v37, %v197_v29 }
 0x23f   :  { %v223_v40 = vsel %vm222_vm3, %v213_v38, %v216_v36 }
 0x240   :  { %v224_v41 = vsel %vm36_vm1, %v223_v40, %v220_v39 }
 0x241   :  { %226 = vst.msk [vmem:[#allocation2] sm:$0xff] %vm225_vm4, %v224_v41 }
 0x242   :  { %326 = shalt.err (!%p323_p4)
}
 0x243   :  { %s327_s30 = scalar_lea.hbm %s448_s6, 128 }
 0x244   :  { %p328_p5 = scmp.ne.s32.totalorder %s448_s6, %s327_s30  ;;  %p331_p6 = scmp.lt.u32.totalorder %s327_s30, %s448_s6 }
 0x246   :  { %p333_p7 = pnand %p331_p6, %p328_p5 }
 0x248   :  { %336 = shalt.err (!%p333_p7)
}
 0x249   :  { %236 = dma.vmem_to_hbm [thread:$0]  %s234_s27, 128, %s448_s6, [#allocation3]  }
 0x24a   :  { %337 = dma.done.wait [#allocation3], 128  }
 0x24b   :  { %338 = vsyncadd [#allocation3], 4294967168 }
 0x24c   :  { %240 = vsyncpa [#allocation3], 1 }

</bundles_post_ra>
